<compile_context>
chip_gen: v5e
topology: v5e:2x2
jax: 0.10.0
libtpu: 0.0.40
codegen_flags: <defaults>
</compile_context>

<pallas_src>
import math
from functools import partial

import jax
import jax.numpy as jnp
from jax.experimental import pallas as pl
from jax.experimental.pallas import tpu as pltpu


def _round_up(x, m):
    return ((x + m - 1) // m) * m


def _backward_rep_kernel(*refs, num_hidden_layers, scale, compute_dtype):
    """refs = (obs, w0, b0, w1, b1, ..., wL, bL, out).

    Hidden layers: Linear + ReLU (backward_activation). Final layer: Linear,
    then L2-normalize along dim=1 scaled by sqrt(z_dimension)
    (matches BackwardModel.forward in agents/fb/models.py).
    Padded output lanes of every layer are exactly zero (zero-padded W columns
    and biases), so the norm over the padded width equals the true norm.
    """
    obs_ref = refs[0]
    out_ref = refs[-1]
    wb = refs[1:-1]

    h = obs_ref[...]

    # Hidden layers: Linear + activation (ReLU). MXU in compute_dtype, f32 accumulate.
    for layer in range(num_hidden_layers):
        w = wb[2 * layer][...]            # resident, compute_dtype
        b = wb[2 * layer + 1][...]        # resident, f32
        h = jnp.dot(h.astype(compute_dtype), w,
                    preferred_element_type=jnp.float32) + b
        h = jnp.maximum(h, 0.0)

    # Final projection to (padded) z_dimension (no activation).
    w = wb[2 * num_hidden_layers][...]
    b = wb[2 * num_hidden_layers + 1][...]
    z = jnp.dot(h.astype(compute_dtype), w,
                preferred_element_type=jnp.float32) + b

    # sqrt(z_dim) * z / max(||z||, 1e-12)
    #   == z * (sqrt(z_dim) * rsqrt(max(sumsq, 1e-24)))   (reduce->XLU, rsqrt->EUP)
    sumsq = jnp.sum(z * z, axis=-1, keepdims=True)
    inv = jax.lax.rsqrt(jnp.maximum(sumsq, 1e-24))
    out_ref[...] = (z * (scale * inv)).astype(out_ref.dtype)


def prepare_params(params, *, compute_dtype=jnp.bfloat16, lane_multiple=128):
    """One-time parameter preparation (hoisted out of the per-call hot path).

    * Zero-pads every layer's output width (W columns + bias) to a multiple of
      128 lanes, and the next layer's input rows to match, so all GEMM N dims
      and the final store are lane-dense. Zero padding keeps activations /
      z-norm mathematically identical.
    * Casts weights to the MXU compute dtype once; biases stay f32.
    """
    prepared = []
    prev_pad = 0
    for w, b in params:
        _, out_dim = w.shape
        out_pad = _round_up(out_dim, lane_multiple) - out_dim
        w = jnp.pad(jnp.asarray(w, jnp.float32), ((0, prev_pad), (0, out_pad)))
        b = jnp.pad(jnp.asarray(b, jnp.float32).reshape(1, -1),
                    ((0, 0), (0, out_pad)))
        prepared.append((w.astype(compute_dtype), b))
        prev_pad = out_pad
    return prepared


def backward_representation(observation, prepared_params, *, z_dimension,
                            batch_tile=1024, compute_dtype=jnp.bfloat16,
                            out_dtype=jnp.float32, obs_buffers=2):
    """observation: [B, obs_dim] (f32 or bf16 — used as supplied, no wrapper cast).
    prepared_params: output of prepare_params (lane-padded, compute_dtype weights)."""
    batch, obs_dim = observation.shape
    num_hidden_layers = len(prepared_params) - 1
    z_padded = prepared_params[-1][0].shape[1]

    # ---- generation-aware VMEM budget -------------------------------------
    try:
        vmem_capacity = int(pltpu.get_tpu_info().vmem_capacity_bytes)
    except Exception:
        vmem_capacity = 64 * 1024 * 1024          # conservative (v7x per-TC)
    vmem_cap = max(32 * 1024 * 1024, int(vmem_capacity * 0.78))  # ~22% headroom

    obs_bytes = observation.dtype.itemsize
    out_bytes = jnp.dtype(out_dtype).itemsize
    param_bytes = sum(w.size * w.dtype.itemsize + b.size * b.dtype.itemsize
                      for w, b in prepared_params)
    max_width = max(w.shape[1] for w, _ in prepared_params)

    def vmem_estimate(tb):
        est = obs_buffers * tb * obs_dim * obs_bytes   # streamed obs buffers
        est += 2 * tb * z_padded * out_bytes           # double-buffered output
        est += param_bytes                             # resident weights/biases
        est += 2 * tb * max_width * 4                  # f32 activation temporaries
        return est

    # ---- batch tile: multiple of 8; >=2 grid steps when possible (v7x megacore)
    tb = _round_up(min(batch_tile, _round_up(batch, 8)), 8)
    if _round_up(batch, tb) // tb < 2 and batch >= 16:
        tb = _round_up((batch + 1) // 2, 8)
    # Shrink tb until the resident + streamed footprint fits the VMEM budget.
    while tb > 8 and 2 * vmem_estimate(tb) > vmem_cap:
        tb = max(8, _round_up(tb // 2, 8))
    # TODO(synk): if the resident params alone exceed the v7x budget (very wide
    # MLPs), fall back to an "arbitrary" K/N-tiled grid axis instead of
    # batch-only tiling.

    padded_batch = _round_up(batch, tb)
    if padded_batch != batch:
        observation = jnp.pad(observation, ((0, padded_batch - batch), (0, 0)))

    # Streamed obs tile (optionally deeper-buffered), resident weights/biases.
    obs_spec_kwargs = {}
    if obs_buffers != 2:
        obs_spec_kwargs["pipeline_mode"] = pl.Buffered(obs_buffers)
    flat_inputs = [observation]
    in_specs = [pl.BlockSpec((tb, obs_dim), lambda i: (i, 0), **obs_spec_kwargs)]
    for w, b in prepared_params:
        flat_inputs += [w, b]
        in_specs += [pl.BlockSpec(w.shape, lambda i: (0, 0)),
                     pl.BlockSpec(b.shape, lambda i: (0, 0))]

    out_specs = pl.BlockSpec((tb, z_padded), lambda i: (i, 0))
    grid = (padded_batch // tb,)

    vmem_limit = int(min(max(2 * vmem_estimate(tb), 32 * 1024 * 1024), vmem_cap))

    kernel = partial(_backward_rep_kernel,
                     num_hidden_layers=num_hidden_layers,
                     scale=math.sqrt(float(z_dimension)),
                     compute_dtype=compute_dtype)

    out = pl.pallas_call(
        kernel,
        out_shape=jax.ShapeDtypeStruct((padded_batch, z_padded), out_dtype),
        grid_spec=pltpu.PrefetchScalarGridSpec(
            num_scalar_prefetch=0,
            grid=grid,
            in_specs=in_specs,
            out_specs=out_specs,
        ),
        compiler_params=pltpu.CompilerParams(
            dimension_semantics=("parallel",),
            vmem_limit_bytes=vmem_limit,
        ),
    )(*flat_inputs)

    out = out[:, :z_dimension]           # drop zero-padded lanes
    return out[:batch] if padded_batch != batch else out


def init_params(key, observation_length, z_dimension, hidden_dimension,
                hidden_layers):
    """Deterministic synthetic init mirroring the MLP layer shapes of BackwardModel."""
    dims = [observation_length] + [hidden_dimension] * hidden_layers + [z_dimension]
    params = []
    for i in range(len(dims) - 1):
        key, kw, kb = jax.random.split(key, 3)
        fan_in = dims[i]
        bound = 1.0 / math.sqrt(fan_in)
        w = jax.random.uniform(kw, (dims[i], dims[i + 1]),
                               minval=-bound, maxval=bound, dtype=jnp.float32)
        b = jax.random.uniform(kb, (1, dims[i + 1]),
                               minval=-bound, maxval=bound, dtype=jnp.float32)
        params.append((w, b))
    return params


def reference_forward(observation, params, *, z_dimension):
    """Pure-JAX reference for correctness checking."""
    h = observation
    for w, b in params[:-1]:
        h = jnp.maximum(h @ w + b, 0.0)
    w, b = params[-1]
    z = h @ w + b
    norm = jnp.maximum(jnp.sqrt(jnp.sum(z * z, axis=-1, keepdims=True)), 1e-12)
    return math.sqrt(float(z_dimension)) * z / norm


if __name__ == "__main__":
    # Small shapes consistent with the module's constructor.
    observation_length = 32
    z_dimension = 16
    backward_hidden_dimension = 64
    backward_hidden_layers = 2
    batch = 8

    key = jax.random.PRNGKey(0)
    key, k_obs = jax.random.split(key)
    observation = jax.random.normal(k_obs, (batch, observation_length),
                                    dtype=jnp.float32)

    params = init_params(key, observation_length, z_dimension,
                         backward_hidden_dimension, backward_hidden_layers)

    # TODO(synk): preprocess=True path (AbstractPreprocessor) not exercised; it is
    # just another MLP and would compose identically in front of this kernel.

    ref = reference_forward(observation, params, z_dimension=z_dimension)

    # One-time parameter preparation (lane padding + dtype cast, hoisted out of
    # the per-call path).
    params_f32 = prepare_params(params, compute_dtype=jnp.float32)
    params_bf16 = prepare_params(params, compute_dtype=jnp.bfloat16)

    # Exact-semantics check: f32 MXU operands, tight tolerance.
    out_f32 = backward_representation(observation, params_f32,
                                      z_dimension=z_dimension,
                                      compute_dtype=jnp.float32)
    out_f32 = jax.block_until_ready(out_f32)
    assert out_f32.shape == (batch, z_dimension)
    assert jnp.allclose(out_f32, ref, atol=1e-4, rtol=1e-4), "f32 mismatch vs reference"

    # Default fast path: bf16 MXU operands with f32 accumulation, loose tolerance.
    out = backward_representation(observation, params_bf16,
                                  z_dimension=z_dimension)
    out = jax.block_until_ready(out)
    assert out.shape == (batch, z_dimension)
    assert jnp.allclose(out, ref, atol=5e-2, rtol=5e-2), "bf16 mismatch vs reference"
    # Each output row has L2 norm == sqrt(z_dimension) (normalization done in f32).
    assert jnp.allclose(jnp.linalg.norm(out, axis=1),
                        math.sqrt(z_dimension), atol=1e-3)

    print("KERNEL_OK")
</pallas_src>

<mosaic_0001>
module attributes {stable_mosaic.version = 11 : i64} {
  func.func @_backward_rep_kernel(%arg0: i32, %arg1: memref<8x32xf32, #tpu.memory_space<vmem>>, %arg2: memref<32x128xf32, #tpu.memory_space<vmem>>, %arg3: memref<1x128xf32, #tpu.memory_space<vmem>>, %arg4: memref<128x128xf32, #tpu.memory_space<vmem>>, %arg5: memref<1x128xf32, #tpu.memory_space<vmem>>, %arg6: memref<128x128xf32, #tpu.memory_space<vmem>>, %arg7: memref<1x128xf32, #tpu.memory_space<vmem>>, %arg8: memref<8x128xf32, #tpu.memory_space<vmem>>) attributes {dimension_semantics = [#tpu.dimension_semantics<parallel>], iteration_bounds = array<i64: 1>, scalar_prefetch = 0 : i64, scratch_operands = 0 : i64, tpu.core_type = #tpu.core_type<tc>, window_params = [{transform_indices = @transform_0, window_bounds = array<i64: 8, 32>}, {pipeline_mode = #tpu.pipeline_mode<synchronous>, transform_indices = @transform_1, window_bounds = array<i64: 32, 128>}, {pipeline_mode = #tpu.pipeline_mode<synchronous>, transform_indices = @transform_2, window_bounds = array<i64: 1, 128>}, {pipeline_mode = #tpu.pipeline_mode<synchronous>, transform_indices = @transform_3, window_bounds = array<i64: 128, 128>}, {pipeline_mode = #tpu.pipeline_mode<synchronous>, transform_indices = @transform_4, window_bounds = array<i64: 1, 128>}, {pipeline_mode = #tpu.pipeline_mode<synchronous>, transform_indices = @transform_5, window_bounds = array<i64: 128, 128>}, {pipeline_mode = #tpu.pipeline_mode<synchronous>, transform_indices = @transform_6, window_bounds = array<i64: 1, 128>}, {transform_indices = @transform_7, window_bounds = array<i64: 8, 128>}]} {
    %c0 = arith.constant 0 : index
    %c0_0 = arith.constant 0 : index
    %0 = vector.load %arg1[%c0, %c0_0] : memref<8x32xf32, #tpu.memory_space<vmem>>, vector<8x32xf32>
    %c0_1 = arith.constant 0 : index
    %c0_2 = arith.constant 0 : index
    %1 = vector.load %arg2[%c0_1, %c0_2] : memref<32x128xf32, #tpu.memory_space<vmem>>, vector<32x128xf32>
    %c0_3 = arith.constant 0 : index
    %c0_4 = arith.constant 0 : index
    %2 = vector.load %arg3[%c0_3, %c0_4] : memref<1x128xf32, #tpu.memory_space<vmem>>, vector<1x128xf32>
    %cst = arith.constant dense<0.000000e+00> : vector<8x128xf32>
    %3 = tpu.matmul %0, %1, %cst {dimension_numbers = #tpu.dot_dimension_numbers<[1], [0], [0], [1], [0, 0, 1, 1], [], []>} : vector<8x32xf32>, vector<32x128xf32>, vector<8x128xf32> -> vector<8x128xf32>
    %4 = vector.broadcast %2 : vector<1x128xf32> to vector<8x128xf32>
    %5 = arith.addf %3, %4 : vector<8x128xf32>
    %cst_5 = arith.constant 0.000000e+00 : f32
    %6 = vector.broadcast %cst_5 : f32 to vector<8x128xf32>
    %7 = arith.maximumf %5, %6 : vector<8x128xf32>
    %c0_6 = arith.constant 0 : index
    %c0_7 = arith.constant 0 : index
    %8 = vector.load %arg4[%c0_6, %c0_7] : memref<128x128xf32, #tpu.memory_space<vmem>>, vector<128x128xf32>
    %c0_8 = arith.constant 0 : index
    %c0_9 = arith.constant 0 : index
    %9 = vector.load %arg5[%c0_8, %c0_9] : memref<1x128xf32, #tpu.memory_space<vmem>>, vector<1x128xf32>
    %cst_10 = arith.constant dense<0.000000e+00> : vector<8x128xf32>
    %10 = tpu.matmul %7, %8, %cst_10 {dimension_numbers = #tpu.dot_dimension_numbers<[1], [0], [0], [1], [0, 0, 1, 1], [], []>} : vector<8x128xf32>, vector<128x128xf32>, vector<8x128xf32> -> vector<8x128xf32>
    %11 = vector.broadcast %9 : vector<1x128xf32> to vector<8x128xf32>
    %12 = arith.addf %10, %11 : vector<8x128xf32>
    %cst_11 = arith.constant 0.000000e+00 : f32
    %13 = vector.broadcast %cst_11 : f32 to vector<8x128xf32>
    %14 = arith.maximumf %12, %13 : vector<8x128xf32>
    %c0_12 = arith.constant 0 : index
    %c0_13 = arith.constant 0 : index
    %15 = vector.load %arg6[%c0_12, %c0_13] : memref<128x128xf32, #tpu.memory_space<vmem>>, vector<128x128xf32>
    %c0_14 = arith.constant 0 : index
    %c0_15 = arith.constant 0 : index
    %16 = vector.load %arg7[%c0_14, %c0_15] : memref<1x128xf32, #tpu.memory_space<vmem>>, vector<1x128xf32>
    %cst_16 = arith.constant dense<0.000000e+00> : vector<8x128xf32>
    %17 = tpu.matmul %14, %15, %cst_16 {dimension_numbers = #tpu.dot_dimension_numbers<[1], [0], [0], [1], [0, 0, 1, 1], [], []>} : vector<8x128xf32>, vector<128x128xf32>, vector<8x128xf32> -> vector<8x128xf32>
    %18 = vector.broadcast %16 : vector<1x128xf32> to vector<8x128xf32>
    %19 = arith.addf %17, %18 : vector<8x128xf32>
    %20 = arith.mulf %19, %19 : vector<8x128xf32>
    %cst_17 = arith.constant dense<0.000000e+00> : vector<8xf32>
    %21 = vector.multi_reduction <add>, %20, %cst_17 [1] : vector<8x128xf32> to vector<8xf32>
    %22 = vector.shape_cast %21 : vector<8xf32> to vector<8x1xf32>
    %cst_18 = arith.constant 1.000000e-24 : f32
    %23 = vector.broadcast %cst_18 : f32 to vector<8x1xf32>
    %24 = arith.maximumf %22, %23 : vector<8x1xf32>
    %25 = math.rsqrt %24 : vector<8x1xf32>
    %cst_19 = arith.constant 4.000000e+00 : f32
    %26 = vector.broadcast %cst_19 : f32 to vector<8x1xf32>
    %27 = arith.mulf %26, %25 : vector<8x1xf32>
    %28 = vector.broadcast %27 : vector<8x1xf32> to vector<8x128xf32>
    %29 = arith.mulf %19, %28 : vector<8x128xf32>
    %c0_20 = arith.constant 0 : index
    %c0_21 = arith.constant 0 : index
    %30 = vector.load %arg8[%c0_20, %c0_21] : memref<8x128xf32, #tpu.memory_space<vmem>>, vector<8x128xf32>
    tpu.vector_store %arg8[%c0_20, %c0_21], %29 {strides = array<i32>} : memref<8x128xf32, #tpu.memory_space<vmem>>, vector<8x128xf32>,
    return
  }
  func.func @transform_0(%arg0: i32) -> (i32, i32) {
    %c0_i32 = arith.constant 0 : i32
    %c0_i32_0 = arith.constant 0 : i32
    return %arg0, %c0_i32 : i32, i32
  }
  func.func @transform_1(%arg0: i32) -> (i32, i32) {
    %c0_i32 = arith.constant 0 : i32
    %c0_i32_0 = arith.constant 0 : i32
    %c0_i32_1 = arith.constant 0 : i32
    return %c0_i32, %c0_i32_0 : i32, i32
  }
  func.func @transform_2(%arg0: i32) -> (i32, i32) {
    %c0_i32 = arith.constant 0 : i32
    %c0_i32_0 = arith.constant 0 : i32
    %c0_i32_1 = arith.constant 0 : i32
    return %c0_i32, %c0_i32_0 : i32, i32
  }
  func.func @transform_3(%arg0: i32) -> (i32, i32) {
    %c0_i32 = arith.constant 0 : i32
    %c0_i32_0 = arith.constant 0 : i32
    %c0_i32_1 = arith.constant 0 : i32
    return %c0_i32, %c0_i32_0 : i32, i32
  }
  func.func @transform_4(%arg0: i32) -> (i32, i32) {
    %c0_i32 = arith.constant 0 : i32
    %c0_i32_0 = arith.constant 0 : i32
    %c0_i32_1 = arith.constant 0 : i32
    return %c0_i32, %c0_i32_0 : i32, i32
  }
  func.func @transform_5(%arg0: i32) -> (i32, i32) {
    %c0_i32 = arith.constant 0 : i32
    %c0_i32_0 = arith.constant 0 : i32
    %c0_i32_1 = arith.constant 0 : i32
    return %c0_i32, %c0_i32_0 : i32, i32
  }
  func.func @transform_6(%arg0: i32) -> (i32, i32) {
    %c0_i32 = arith.constant 0 : i32
    %c0_i32_0 = arith.constant 0 : i32
    %c0_i32_1 = arith.constant 0 : i32
    return %c0_i32, %c0_i32_0 : i32, i32
  }
  func.func @transform_7(%arg0: i32) -> (i32, i32) {
    %c0_i32 = arith.constant 0 : i32
    %c0_i32_0 = arith.constant 0 : i32
    return %arg0, %c0_i32 : i32, i32
  }
}

</mosaic_0001>

<bundles_post_ra>
// kernel: tpu_custom_call.1
= control target key start
LH: loop header
LB: loop body
LE: loop exit
PB: predicated region body
PF: predicated region fallthrough
CT: control target
= control target key end

     0   :  { %12 = vsyncpa [#allocation3], 0  ;;  %s451_s0 = inlined_call_operand.hbm [shape: f32[8,32], index: 0, kind: input, shape index: {}]   ;;  %s452_s1 = inlined_call_operand.hbm [shape: f32[32,128], index: 1, kind: input, shape index: {}]   ;;  %s453_s2 = inlined_call_operand.vmem [shape: f32[1,128], index: 2, kind: input, shape index: {}]   ;;  %s454_s3 = inlined_call_operand.hbm [shape: f32[128,128], index: 3, kind: input, shape index: {}]   ;;  %s455_s4 = inlined_call_operand.vmem [shape: f32[1,128], index: 4, kind: input, shape index: {}]   ;;  %s456_s5 = inlined_call_operand.hbm [shape: f32[128,128], index: 5, kind: input, shape index: {}]   ;;  %s457_s6 = inlined_call_operand.vmem [shape: f32[1,128], index: 6, kind: input, shape index: {}]   ;;  %s458_s7 = inlined_call_operand.hbm [shape: f32[8,128], index: 7, kind: output, shape index: {}]  }
   0x1   :  { %13 = vsyncpa [#allocation6], 0 }
   0x2   :  { %14 = vsyncpa [#allocation9], 0  ;;  %s31_s26 = sshll.u32 %s452_s1, 4  ;;  %s32_s26 = int_to_ptr.hbm [resolvable:$true] %s31_s26 }
   0x3   :  { %15 = vsyncpa [#allocation4], 0  ;;  %s380_s27 = smov [#allocation5]   ;;  %s21_s8 = sshll.u32 %s451_s0, 4  ;;  %s22_s8 = int_to_ptr.hbm [resolvable:$true] %s21_s8 }
   0x4   :  { %s33_s28 = sshll.u32 %s380_s27, 4  ;;  %s381_s9 = smov 128   ;;  %s34_s28 = int_to_ptr.vmem [resolvable:$true] %s33_s28 }
   0x5   :  { %s382_s10 = smov 8   ;;  %s383_s11 = smov [#allocation2]  }
   0x6   :  { %39 = dma.hbm_to_vmem [thread:$0]  %s32_s26, 512, %s34_s28, [#allocation6], %s381_s9, %s381_s9, %s382_s10  }
   0x7   :  { %s23_s12 = sshll.u32 %s383_s11, 4  ;;  %s46_s15 = sshll.u32 %s454_s3, 4  ;;  %s24_s12 = int_to_ptr.vmem [resolvable:$true] %s23_s12  ;;  %s47_s15 = int_to_ptr.hbm [resolvable:$true] %s46_s15 }
   0x8   :  { %26 = dma.hbm_to_vmem [thread:$0]  %s22_s8, 128, %s24_s12, [#allocation3]  }
   0x9   :  { %s61_s17 = sshll.u32 %s456_s5, 4  ;;  %s384_s18 = smov [#allocation7]   ;;  %s62_s17 = int_to_ptr.hbm [resolvable:$true] %s61_s17 }
   0xa   :  { %s48_s19 = sshll.u32 %s384_s18, 4  ;;  %s385_s0 = smov [#allocation8]   ;;  %s49_s19 = int_to_ptr.vmem [resolvable:$true] %s48_s19 }
   0xb   :  { %54 = dma.hbm_to_vmem [thread:$0]  %s47_s15, 2048, %s49_s19, [#allocation6], %s381_s9, %s381_s9, %s382_s10  }
   0xc   :  { %s63_s20 = sshll.u32 %s385_s0, 4  ;;  %s64_s20 = int_to_ptr.vmem [resolvable:$true] %s63_s20 }
   0xd   :  { %69 = dma.hbm_to_vmem [thread:$0]  %s62_s17, 2048, %s64_s20, [#allocation9], %s381_s9, %s381_s9, %s382_s10  }
   0xe   :  { %372 = dma.done.wait [#allocation3], 128  }
   0xf   :  { %373 = vsyncadd [#allocation3], 4294967168 }
  0x10   :  { %374 = dma.done.wait [#allocation6], 2560  }
  0x11   :  { %375 = vsyncadd [#allocation6], 4294964736 }
  0x12   :  { %376 = dma.done.wait [#allocation9], 2048  }
  0x13   :  { %377 = vsyncadd [#allocation9], 4294965248  ;;  %v92_v0 = vld [vmem:[#allocation5 + $0x18] sm:$0xff]  ;;  %v91_v1 = vld [vmem:[#allocation5 + $0x10] sm:$0xff]  ;;  %vm97_vm0 = vcmask 261120   ;;  %s227_s26 = sshll.u32 %s458_s7, 4  ;;  %s228_s26 = int_to_ptr.hbm [resolvable:$true] %s227_s26 }
  0x14   :  { %113 = vmatpush.msra.mxu0 %v92_v0  ;;  %v137_v2 = vld [vmem:[#allocation7 + $0x78] sm:$0xff]  ;;  %v90_v3 = vld [vmem:[#allocation5 + $0x8] sm:$0xff]  ;;  %v136_v4 = vld [vmem:[#allocation7 + $0x70] sm:$0xff] }
  0x15   :  { %142 = vmatpush.msra.mxu1 %v137_v2  ;;  %v135_v5 = vld [vmem:[#allocation7 + $0x68] sm:$0xff]  ;;  %v89_v6 = vld [vmem:[#allocation5] sm:$0xff]  ;;  %v88_v7 = vld [vmem:[#allocation2] sm:$0xff] }
  0x16   :  { %114 = vmatpush.msra.mxu0 %v91_v1  ;;  %v134_v8 = vld [vmem:[#allocation7 + $0x60] sm:$0xff]  ;;  %v133_v9 = vld [vmem:[#allocation7 + $0x58] sm:$0xff]  ;;  %v132_v10 = vld [vmem:[#allocation7 + $0x50] sm:$0xff] }
  0x17   :  { %143 = vmatpush.msra.mxu1 %v136_v4  ;;  %v131_v11 = vld [vmem:[#allocation7 + $0x48] sm:$0xff]  ;;  %v130_v12 = vld [vmem:[#allocation7 + $0x40] sm:$0xff]  ;;  %v129_v13 = vld [vmem:[#allocation7 + $0x38] sm:$0xff] }
  0x18   :  { %115 = vmatpush.msra.mxu0 %v90_v3  ;;  %v128_v14 = vld [vmem:[#allocation7 + $0x30] sm:$0xff]  ;;  %v127_v15 = vld [vmem:[#allocation7 + $0x28] sm:$0xff]  ;;  %v126_v16 = vld [vmem:[#allocation7 + $0x20] sm:$0xff] }
  0x19   :  { %144 = vmatpush.msra.mxu1 %v135_v5  ;;  %v125_v17 = vld [vmem:[#allocation7 + $0x18] sm:$0xff]  ;;  %v124_v18 = vld [vmem:[#allocation7 + $0x10] sm:$0xff]  ;;  %v123_v19 = vld [vmem:[#allocation7 + $0x8] sm:$0xff] }
  0x1a   :  { %116 = vmatpush.msra.mxu0 %v89_v6  ;;  %v122_v20 = vld [vmem:[#allocation7] sm:$0xff]  ;;  %v178_v21 = vld [vmem:[#allocation8 + $0x78] sm:$0xff]  ;;  %v177_v22 = vld [vmem:[#allocation8 + $0x70] sm:$0xff] }
  0x1b   :  { %239 = vmatmul.msk.f32.vlgmr.msra.gmra.mxu0 %vm97_vm0, %v88_v7  ;;  %145 = vmatpush.msra.mxu1 %v134_v8  ;;  %v176_v23 = vld [vmem:[#allocation8 + $0x68] sm:$0xff]  ;;  %v175_v24 = vld [vmem:[#allocation8 + $0x60] sm:$0xff]  ;;  %v174_v25 = vld [vmem:[#allocation8 + $0x58] sm:$0xff] }
  0x1c   :  { %183 = vmatpush.msra.mxu2 %v178_v21  ;;  %v173_v26 = vld [vmem:[#allocation8 + $0x50] sm:$0xff]  ;;  %v172_v27 = vld [vmem:[#allocation8 + $0x48] sm:$0xff]  ;;  %v171_v28 = vld [vmem:[#allocation8 + $0x40] sm:$0xff] }
  0x1d   :  { %146 = vmatpush.msra.mxu1 %v133_v9  ;;  %v170_v29 = vld [vmem:[#allocation8 + $0x38] sm:$0xff]  ;;  %v169_v30 = vld [vmem:[#allocation8 + $0x30] sm:$0xff]  ;;  %v168_v31 = vld [vmem:[#allocation8 + $0x28] sm:$0xff] }
  0x1e   :  { %184 = vmatpush.msra.mxu2 %v177_v22  ;;  %v167_v32 = vld [vmem:[#allocation8 + $0x20] sm:$0xff]  ;;  %v166_v33 = vld [vmem:[#allocation8 + $0x18] sm:$0xff]  ;;  %v165_v38 = vld [vmem:[#allocation8 + $0x10] sm:$0xff] }
  0x1f   :  { %147 = vmatpush.msra.mxu1 %v132_v10  ;;  %v247_v34 = vld [vmem:[%s453_s2] ss:$0 sm:$0xff]  ;;  %v164_v39 = vld [vmem:[#allocation8 + $0x8] sm:$0xff]  ;;  %v163_v40 = vld [vmem:[#allocation8] sm:$0xff] }
  0x20   :  { %185 = vmatpush.msra.mxu2 %v176_v23  ;;  %v248_v41 = vld [vmem:[%s455_s4] ss:$0 sm:$0xff]  ;;  %s386_s4 = smov [#allocation10]  }
  0x21   :  { %148 = vmatpush.msra.mxu1 %v131_v11  ;;  %v249_v45 = vld [vmem:[%s457_s6] ss:$0 sm:$0xff]  ;;  %s225_s24 = sshll.u32 %s386_s4, 4  ;;  %s226_s24 = int_to_ptr.vmem [resolvable:$true] %s225_s24 }
  0x22   :  { %186 = vmatpush.msra.mxu2 %v175_v24 }
  0x23   :  { %149 = vmatpush.msra.mxu1 %v130_v12 }
  0x24   :  { %187 = vmatpush.msra.mxu2 %v174_v25 }
  0x25   :  { %150 = vmatpush.msra.mxu1 %v129_v13 }
  0x26   :  { %188 = vmatpush.msra.mxu2 %v173_v26 }
  0x27   :  { %151 = vmatpush.msra.mxu1 %v128_v14 }
  0x28   :  { %189 = vmatpush.msra.mxu2 %v172_v27 }
  0x29   :  { %152 = vmatpush.msra.mxu1 %v127_v15 }
  0x2a   :  { %190 = vmatpush.msra.mxu2 %v171_v28 }
  0x2b   :  { %153 = vmatpush.msra.mxu1 %v126_v16 }
  0x2c   :  { %191 = vmatpush.msra.mxu2 %v170_v29 }
  0x2d   :  { %154 = vmatpush.msra.mxu1 %v125_v17 }
  0x2e   :  { %192 = vmatpush.msra.mxu2 %v169_v30 }
  0x2f   :  { %155 = vmatpush.msra.mxu1 %v124_v18 }
  0x30   :  { %193 = vmatpush.msra.mxu2 %v168_v31 }
  0x31   :  { %156 = vmatpush.msra.mxu1 %v123_v19 }
  0x32   :  { %194 = vmatpush.msra.mxu2 %v167_v32 }
  0x33   :  { %157 = vmatpush.msra.mxu1 %v122_v20 }
  0x34   :  { %195 = vmatpush.msra.mxu2 %v166_v33 }
  0x36   :  { %196 = vmatpush.msra.mxu2 %v165_v38 }
  0x38   :  { %197 = vmatpush.msra.mxu2 %v164_v39 }
  0x3a   :  { %198 = vmatpush.msra.mxu2 %v163_v40 }
  0x98   :  { %v118_v35 = vpop.f32.mrf.mxu0 }
  0x99   :  { %v119_v36 = vadd.f32 %v247_v34, %v118_v35 }
  0x9b   :  { %v121_v37 = vmax.f32 %v119_v36, 0.0 }
  0x9d   :  { %158 = vmatmul.f32.vlgmr.msra.gmra.mxu1 %v121_v37 }
 0x11a   :  { %v159_v42 = vpop.f32.mrf.mxu1 }
 0x11b   :  { %v160_v43 = vadd.f32 %v248_v41, %v159_v42 }
 0x11d   :  { %v162_v44 = vmax.f32 %v160_v43, 0.0 }
 0x11f   :  { %199 = vmatmul.f32.vlgmr.msra.gmra.mxu2 %v162_v44 }
 0x1a2   :  { %v200_v46 = vpop.f32.mrf.mxu2 }
 0x1a3   :  { %v201_v47 = vadd.f32 %v249_v45, %v200_v46 }
 0x1a5   :  { %v203_v48 = vmul.f32 %v201_v47, %v201_v47 }
 0x1a7   :  { %204 = vadd.xlane.f32.xlu0 %v203_v48 }
 0x21a   :  { %v205_v49 = vpop.xlane.xlu0 %204 }
 0x21b   :  { %v206_v50 = vmax.f32 %v205_v49, 1e-24 }
 0x21d   :  { %250 = vrsqrt.f32 %v206_v50  ;;  %vm213_vm2 = vweird.f32 %v206_v50 }
 0x223   :  { %v251_v51 = vpop.eup %250 }
 0x224   :  { %v208_v52 = vmul.f32 %v251_v51, %v206_v50  ;;  %vm214_vm1 = vweird.f32 %v251_v51 }
 0x225   :  { %vm215_vm3 = vmor %vm213_vm2, %vm214_vm1 }
 0x226   :  { %v209_v53 = vmul.f32 %v251_v51, %v208_v52 }
 0x228   :  { %v210_v54 = vmul.f32 0.5, %v209_v53 }
 0x22a   :  { %v211_v55 = vsub.f32 1.5, %v210_v54 }
 0x22c   :  { %v212_v56 = vmul.f32 %v251_v51, %v211_v55 }
 0x22e   :  { %v216_v57 = vsel %vm215_vm3, %v251_v51, %v212_v56 }
 0x22f   :  { %v217_v58 = vmul.f32 4.0, %v216_v57 }
 0x231   :  { %v218_v59 = vmul.f32 %v217_v58, %v201_v47 }
 0x233   :  { %219 = vst [vmem:[#allocation10] sm:$0xff] %v218_v59 }
 0x234   :  { %230 = dma.vmem_to_hbm [thread:$0]  %s226_s24, 128, %s228_s26, [#allocation4]  }
 0x235   :  { %378 = dma.done.wait [#allocation4], 128  }
 0x236   :  { %379 = vsyncadd [#allocation4], 4294967168 }
 0x237   :  { %235 = vsyncpa [#allocation3], 1 }
 0x238   :  { %236 = vsyncpa [#allocation6], 1 }
 0x239   :  { %237 = vsyncpa [#allocation9], 1 }
 0x23a   :  { %238 = vsyncpa [#allocation4], 1 }

</bundles_post_ra>
